<compile_context>
chip_gen: v5e
topology: v5e:2x2
jax: 0.10.0
libtpu: 0.0.40
codegen_flags: <defaults>
</compile_context>

<pallas_src>
import jax
import jax.numpy as jnp
from jax.experimental import pallas as pl
from jax.experimental.pallas import tpu as pltpu

_LANES = 512          # lane-dense last dim (multiple of 128)
_TILE_ROWS = 512      # (512, 512) f32 tile = 1 MiB; 2 bufs x (in+out) = 4 MiB VMEM
_MIN_PALLAS_ELEMS = 16384   # below this, a fused XLA multiply is strictly better


def _noise_mul_kernel(w_ref, x_ref, o_ref):
    # w_ref: (1, 1) scalar conv weight in SMEM (shared across all grid steps).
    # x_ref / o_ref: (tile_rows, _LANES) VMEM tiles.
    o_ref[...] = x_ref[...] * w_ref[0, 0]


def noise_multiplier(x, weight):
    """Forward pass of NoiseMultiplier.

    Args:
      x:      (N, 1, H, W) array (NCHW, single channel).
      weight: (1, 1, 1, 1) conv weight (zero-initialized in the module).

    Returns:
      (N, 1, H, W) array equal to x * weight[0, 0, 0, 0].
    """
    N, C, H, W = x.shape
    assert C == 1, "NoiseMultiplier uses Conv2d(1, 1, 1): single-channel input"

    w_scalar = weight.reshape(()).astype(x.dtype)
    numel = x.size

    # Tiny activations: launch overhead + an un-fusable HBM round trip dwarf the
    # work; let XLA fuse the scalar multiply into neighboring ops.
    if numel < _MIN_PALLAS_ELEMS:
        return x * w_scalar

    # Lane-dense 2-D view: (rows, 512) with the 512-wide axis on the lanes.
    flat = x.reshape(-1)
    padded = pl.cdiv(numel, _LANES) * _LANES
    if padded != numel:
        flat = jnp.pad(flat, (0, padded - numel))
    rows = padded // _LANES
    x2d = flat.reshape(rows, _LANES)

    # Tile rows: either a full 512-row tile (multiple of 8) or the whole array.
    tile_rows = min(_TILE_ROWS, rows)
    grid_r = pl.cdiv(rows, tile_rows)

    w = weight.reshape(1, 1).astype(x.dtype)

    itemsize = jnp.dtype(x.dtype).itemsize
    cost = pl.CostEstimate(
        flops=numel,
        transcendentals=0,
        bytes_accessed=2 * numel * itemsize,
    )

    out2d = pl.pallas_call(
        _noise_mul_kernel,
        out_shape=jax.ShapeDtypeStruct((rows, _LANES), x.dtype),
        grid=(grid_r,),
        in_specs=[
            pl.BlockSpec(memory_space=pltpu.SMEM),                 # scalar weight
            pl.BlockSpec((tile_rows, _LANES), lambda i: (i, 0)),   # input tile
        ],
        out_specs=pl.BlockSpec((tile_rows, _LANES), lambda i: (i, 0)),
        compiler_params=pltpu.CompilerParams(
            dimension_semantics=("parallel",),
        ),
        cost_estimate=cost,
    )(w, x2d)

    return out2d.reshape(-1)[:numel].reshape(N, C, H, W)


if __name__ == "__main__":
    key = jax.random.PRNGKey(0)
    k1, k2, k3 = jax.random.split(key, 3)

    # Case 1: module-default shapes/init (batch=2, channels=1, spatial=16),
    # weight filled with 0 exactly as in the PyTorch module. Uses the fused
    # XLA fast path (below the Pallas size threshold).
    x_small = jax.random.normal(k1, (2, 1, 16, 16), dtype=jnp.float32)
    w_zero = jnp.zeros((1, 1, 1, 1), dtype=jnp.float32)
    out_small = jax.block_until_ready(noise_multiplier(x_small, w_zero))
    assert out_small.shape == x_small.shape and out_small.dtype == x_small.dtype
    assert jnp.allclose(out_small, x_small * w_zero[0, 0, 0, 0])

    # Case 2: larger activation -> Pallas path; nonzero weight so the multiply
    # is actually exercised (weight=0 would hide arithmetic bugs).
    x_big = jax.random.normal(k2, (2, 1, 128, 128), dtype=jnp.float32)
    w_half = jnp.full((1, 1, 1, 1), 0.5, dtype=jnp.float32)
    out_big = jax.block_until_ready(noise_multiplier(x_big, w_half))
    assert out_big.shape == x_big.shape and out_big.dtype == x_big.dtype
    assert jnp.allclose(out_big, x_big * w_half[0, 0, 0, 0]), "mismatch (big)"

    # Case 3: ragged shape -> exercises the pad-to-512-lanes / slice-back path.
    x_ragged = jax.random.normal(k3, (3, 1, 100, 77), dtype=jnp.float32)
    w_neg = jnp.full((1, 1, 1, 1), -1.25, dtype=jnp.float32)
    out_ragged = jax.block_until_ready(noise_multiplier(x_ragged, w_neg))
    assert out_ragged.shape == x_ragged.shape
    assert jnp.allclose(out_ragged, x_ragged * w_neg[0, 0, 0, 0]), "mismatch (ragged)"

    print("KERNEL_OK")
</pallas_src>

<mosaic_0001>
module attributes {stable_mosaic.version = 11 : i64} {
  func.func @_noise_mul_kernel(%arg0: i32, %arg1: memref<1x1xf32, #tpu.memory_space<smem>>, %arg2: memref<64x512xf32, #tpu.memory_space<vmem>>, %arg3: memref<64x512xf32, #tpu.memory_space<vmem>>) attributes {dimension_semantics = [#tpu.dimension_semantics<parallel>], iteration_bounds = array<i64: 1>, scalar_prefetch = 0 : i64, scratch_operands = 0 : i64, tpu.core_type = #tpu.core_type<tc>, window_params = [{transform_indices = @transform_0, window_bounds = array<i64: 1, 1>}, {transform_indices = @transform_1, window_bounds = array<i64: 64, 512>}, {transform_indices = @transform_2, window_bounds = array<i64: 64, 512>}]} {
    %c0 = arith.constant 0 : index
    %c0_0 = arith.constant 0 : index
    %0 = vector.load %arg2[%c0, %c0_0] : memref<64x512xf32, #tpu.memory_space<vmem>>, vector<64x512xf32>
    %c0_1 = arith.constant 0 : index
    %c0_2 = arith.constant 0 : index
    %1 = memref.load %arg1[%c0_1, %c0_2] : memref<1x1xf32, #tpu.memory_space<smem>>
    %2 = vector.broadcast %1 : f32 to vector<64x512xf32>
    %3 = arith.mulf %0, %2 : vector<64x512xf32>
    %c0_3 = arith.constant 0 : index
    %c0_4 = arith.constant 0 : index
    %4 = vector.load %arg3[%c0_3, %c0_4] : memref<64x512xf32, #tpu.memory_space<vmem>>, vector<64x512xf32>
    tpu.vector_store %arg3[%c0_3, %c0_4], %3 {strides = array<i32>} : memref<64x512xf32, #tpu.memory_space<vmem>>, vector<64x512xf32>,
    return
  }
  func.func @transform_0(%arg0: i32) -> (i32, i32) {
    %c0_i32 = arith.constant 0 : i32
    %c0_i32_0 = arith.constant 0 : i32
    %c0_i32_1 = arith.constant 0 : i32
    return %c0_i32, %c0_i32_0 : i32, i32
  }
  func.func @transform_1(%arg0: i32) -> (i32, i32) {
    %c0_i32 = arith.constant 0 : i32
    %c0_i32_0 = arith.constant 0 : i32
    return %arg0, %c0_i32 : i32, i32
  }
  func.func @transform_2(%arg0: i32) -> (i32, i32) {
    %c0_i32 = arith.constant 0 : i32
    %c0_i32_0 = arith.constant 0 : i32
    return %arg0, %c0_i32 : i32, i32
  }
}

</mosaic_0001>

<bundles_post_ra>
// kernel: tpu_custom_call.1
= control target key start
LH: loop header
LB: loop body
LE: loop exit
PB: predicated region body
PF: predicated region fallthrough
CT: control target
= control target key end

     0   :  { %8 = vsyncpa [#allocation4], 0  ;;  %s270_s0 = inlined_call_operand.<no memory space> [shape: f32[1,1], index: 0, kind: input, shape index: {}]   ;;  %s271_s1 = inlined_call_operand.hbm [shape: f32[64,512], index: 1, kind: input, shape index: {}]   ;;  %s272_s2 = inlined_call_operand.hbm [shape: f32[64,512], index: 2, kind: output, shape index: {}]  }
   0x1   :  { %9 = vsyncpa [#allocation5], 0  ;;  %s16_s11 = sshll.u32 %s271_s1, 4  ;;  %s202_s12 = smov [#allocation3]   ;;  %s17_s11 = int_to_ptr.hbm [resolvable:$true] %s16_s11 }
   0x2   :  { %s18_s13 = sshll.u32 %s202_s12, 4  ;;  %s203_s14 = smov 512   ;;  %s19_s13 = int_to_ptr.vmem [resolvable:$true] %s18_s13 }
   0x3   :  { %s204_s15 = smov 32  }
   0x4   :  { %24 = dma.hbm_to_vmem [thread:$0]  %s17_s11, 4096, %s19_s13, [#allocation4], %s203_s14, %s203_s14, %s204_s15  }
   0x5   :  { %198 = dma.done.wait [#allocation4], 4096  }
   0x6   :  { %199 = vsyncadd [#allocation4], 4294963200  ;;  %v230_v0 = vstv %s270_s0  ;;  %v29_v1 = vld [vmem:[#allocation3] sm:$0xff]  ;;  %v30_v2 = vld [vmem:[#allocation3 + $0x8] sm:$0xff]  ;;  %s205_s0 = smov [#allocation6]   ;;  %s133_s20 = sshll.u32 %s272_s2, 4  ;;  %s134_s20 = int_to_ptr.hbm [resolvable:$true] %s133_s20 }
   0x7   :  { %v31_v3 = vld [vmem:[#allocation3 + $0x10] sm:$0xff]  ;;  %v63_v4 = vmul.f32 %v230_v0, %v29_v1  ;;  %v64_v5 = vmul.f32 %v230_v0, %v30_v2  ;;  %v32_v7 = vld [vmem:[#allocation3 + $0x18] sm:$0xff]  ;;  %v33_v8 = vld [vmem:[#allocation3 + $0x20] sm:$0xff]  ;;  %s131_s1 = sshll.u32 %s205_s0, 4  ;;  %s132_s1 = int_to_ptr.vmem [resolvable:$true] %s131_s1 }
   0x8   :  { %v65_v6 = vmul.f32 %v230_v0, %v31_v3  ;;  %v34_v9 = vld [vmem:[#allocation3 + $0x28] sm:$0xff]  ;;  %v66_v10 = vmul.f32 %v230_v0, %v32_v7  ;;  %v35_v11 = vld [vmem:[#allocation3 + $0x30] sm:$0xff]  ;;  %v67_v12 = vmul.f32 %v230_v0, %v33_v8  ;;  %v36_v13 = vld [vmem:[#allocation3 + $0x38] sm:$0xff] }
   0x9   :  { %95 = vst [vmem:[#allocation6] sm:$0xff] %v63_v4  ;;  %v68_v14 = vmul.f32 %v230_v0, %v34_v9  ;;  %v37_v15 = vld [vmem:[#allocation3 + $0x40] sm:$0xff]  ;;  %v69_v16 = vmul.f32 %v230_v0, %v35_v11  ;;  %v38_v17 = vld [vmem:[#allocation3 + $0x48] sm:$0xff]  ;;  %v70_v18 = vmul.f32 %v230_v0, %v36_v13  ;;  %v39_v19 = vld [vmem:[#allocation3 + $0x50] sm:$0xff] }
   0xa   :  { %96 = vst [vmem:[#allocation6 + $0x8] sm:$0xff] %v64_v5  ;;  %v71_v20 = vmul.f32 %v230_v0, %v37_v15  ;;  %v40_v21 = vld [vmem:[#allocation3 + $0x58] sm:$0xff]  ;;  %v72_v22 = vmul.f32 %v230_v0, %v38_v17  ;;  %v41_v23 = vld [vmem:[#allocation3 + $0x60] sm:$0xff]  ;;  %v73_v24 = vmul.f32 %v230_v0, %v39_v19  ;;  %v42_v25 = vld [vmem:[#allocation3 + $0x68] sm:$0xff] }
   0xb   :  { %97 = vst [vmem:[#allocation6 + $0x10] sm:$0xff] %v65_v6  ;;  %v74_v26 = vmul.f32 %v230_v0, %v40_v21  ;;  %v43_v27 = vld [vmem:[#allocation3 + $0x70] sm:$0xff]  ;;  %v75_v28 = vmul.f32 %v230_v0, %v41_v23  ;;  %v44_v29 = vld [vmem:[#allocation3 + $0x78] sm:$0xff]  ;;  %v76_v30 = vmul.f32 %v230_v0, %v42_v25  ;;  %v45_v31 = vld [vmem:[#allocation3 + $0x80] sm:$0xff] }
   0xc   :  { %98 = vst [vmem:[#allocation6 + $0x18] sm:$0xff] %v66_v10  ;;  %v77_v32 = vmul.f32 %v230_v0, %v43_v27  ;;  %v46_v33 = vld [vmem:[#allocation3 + $0x88] sm:$0xff]  ;;  %v78_v34 = vmul.f32 %v230_v0, %v44_v29  ;;  %v47_v35 = vld [vmem:[#allocation3 + $0x90] sm:$0xff]  ;;  %v79_v36 = vmul.f32 %v230_v0, %v45_v31  ;;  %v48_v37 = vld [vmem:[#allocation3 + $0x98] sm:$0xff] }
   0xd   :  { %99 = vst [vmem:[#allocation6 + $0x20] sm:$0xff] %v67_v12  ;;  %v80_v38 = vmul.f32 %v230_v0, %v46_v33  ;;  %v49_v39 = vld [vmem:[#allocation3 + $0xa0] sm:$0xff]  ;;  %v81_v40 = vmul.f32 %v230_v0, %v47_v35  ;;  %v50_v41 = vld [vmem:[#allocation3 + $0xa8] sm:$0xff]  ;;  %v82_v42 = vmul.f32 %v230_v0, %v48_v37  ;;  %v51_v43 = vld [vmem:[#allocation3 + $0xb0] sm:$0xff] }
   0xe   :  { %100 = vst [vmem:[#allocation6 + $0x28] sm:$0xff] %v68_v14  ;;  %v83_v44 = vmul.f32 %v230_v0, %v49_v39  ;;  %v52_v45 = vld [vmem:[#allocation3 + $0xb8] sm:$0xff]  ;;  %v84_v46 = vmul.f32 %v230_v0, %v50_v41  ;;  %v53_v47 = vld [vmem:[#allocation3 + $0xc0] sm:$0xff]  ;;  %v85_v48 = vmul.f32 %v230_v0, %v51_v43  ;;  %v54_v49 = vld [vmem:[#allocation3 + $0xc8] sm:$0xff] }
   0xf   :  { %101 = vst [vmem:[#allocation6 + $0x30] sm:$0xff] %v69_v16  ;;  %v86_v50 = vmul.f32 %v230_v0, %v52_v45  ;;  %v55_v51 = vld [vmem:[#allocation3 + $0xd0] sm:$0xff]  ;;  %v87_v52 = vmul.f32 %v230_v0, %v53_v47  ;;  %v56_v53 = vld [vmem:[#allocation3 + $0xd8] sm:$0xff]  ;;  %v88_v54 = vmul.f32 %v230_v0, %v54_v49  ;;  %v57_v55 = vld [vmem:[#allocation3 + $0xe0] sm:$0xff] }
  0x10   :  { %102 = vst [vmem:[#allocation6 + $0x38] sm:$0xff] %v70_v18  ;;  %v89_v56 = vmul.f32 %v230_v0, %v55_v51  ;;  %v58_v57 = vld [vmem:[#allocation3 + $0xe8] sm:$0xff]  ;;  %v90_v58 = vmul.f32 %v230_v0, %v56_v53  ;;  %v59_v59 = vld [vmem:[#allocation3 + $0xf0] sm:$0xff]  ;;  %v91_v60 = vmul.f32 %v230_v0, %v57_v55  ;;  %v60_v61 = vld [vmem:[#allocation3 + $0xf8] sm:$0xff] }
  0x11   :  { %103 = vst [vmem:[#allocation6 + $0x40] sm:$0xff] %v71_v20  ;;  %v92_v62 = vmul.f32 %v230_v0, %v58_v57  ;;  %v93_v63 = vmul.f32 %v230_v0, %v59_v59  ;;  %v94_v1 = vmul.f32 %v230_v0, %v60_v61 }
  0x12   :  { %104 = vst [vmem:[#allocation6 + $0x48] sm:$0xff] %v72_v22 }
  0x13   :  { %105 = vst [vmem:[#allocation6 + $0x50] sm:$0xff] %v73_v24 }
  0x14   :  { %106 = vst [vmem:[#allocation6 + $0x58] sm:$0xff] %v74_v26 }
  0x15   :  { %107 = vst [vmem:[#allocation6 + $0x60] sm:$0xff] %v75_v28 }
  0x16   :  { %108 = vst [vmem:[#allocation6 + $0x68] sm:$0xff] %v76_v30 }
  0x17   :  { %109 = vst [vmem:[#allocation6 + $0x70] sm:$0xff] %v77_v32 }
  0x18   :  { %110 = vst [vmem:[#allocation6 + $0x78] sm:$0xff] %v78_v34 }
  0x19   :  { %111 = vst [vmem:[#allocation6 + $0x80] sm:$0xff] %v79_v36 }
  0x1a   :  { %112 = vst [vmem:[#allocation6 + $0x88] sm:$0xff] %v80_v38 }
  0x1b   :  { %113 = vst [vmem:[#allocation6 + $0x90] sm:$0xff] %v81_v40 }
  0x1c   :  { %114 = vst [vmem:[#allocation6 + $0x98] sm:$0xff] %v82_v42 }
  0x1d   :  { %115 = vst [vmem:[#allocation6 + $0xa0] sm:$0xff] %v83_v44 }
  0x1e   :  { %116 = vst [vmem:[#allocation6 + $0xa8] sm:$0xff] %v84_v46 }
  0x1f   :  { %117 = vst [vmem:[#allocation6 + $0xb0] sm:$0xff] %v85_v48 }
  0x20   :  { %118 = vst [vmem:[#allocation6 + $0xb8] sm:$0xff] %v86_v50 }
  0x21   :  { %119 = vst [vmem:[#allocation6 + $0xc0] sm:$0xff] %v87_v52 }
  0x22   :  { %120 = vst [vmem:[#allocation6 + $0xc8] sm:$0xff] %v88_v54 }
  0x23   :  { %121 = vst [vmem:[#allocation6 + $0xd0] sm:$0xff] %v89_v56 }
  0x24   :  { %122 = vst [vmem:[#allocation6 + $0xd8] sm:$0xff] %v90_v58 }
  0x25   :  { %123 = vst [vmem:[#allocation6 + $0xe0] sm:$0xff] %v91_v60 }
  0x26   :  { %124 = vst [vmem:[#allocation6 + $0xe8] sm:$0xff] %v92_v62 }
  0x27   :  { %125 = vst [vmem:[#allocation6 + $0xf0] sm:$0xff] %v93_v63 }
  0x28   :  { %126 = vst [vmem:[#allocation6 + $0xf8] sm:$0xff] %v94_v1 }
  0x29   :  { %139 = dma.vmem_to_hbm [thread:$0]  %s132_s1, 4096, %s134_s20, [#allocation5], %s203_s14, %s203_s14, %s204_s15  }
  0x2a   :  { %200 = dma.done.wait [#allocation5], 4096  }
  0x2b   :  { %201 = vsyncadd [#allocation5], 4294963200 }
  0x2c   :  { %144 = vsyncpa [#allocation4], 1 }
  0x2d   :  { %145 = vsyncpa [#allocation5], 1 }

</bundles_post_ra>
